<compile_context>
chip_gen: v5e
topology: v5e:2x2
jax: 0.10.0
libtpu: 0.0.40
codegen_flags: <defaults>
</compile_context>

<pallas_src>
import functools
import math

import jax
import jax.numpy as jnp
from jax.experimental import pallas as pl
from jax.experimental.pallas import tpu as pltpu


# ---------------------------------------------------------------------------
# Kernel
# ---------------------------------------------------------------------------
def _qkv_attention_kernel(q_ref, k_ref, v_ref, o_ref,
                          qs_sc, m_sc, l_sc, acc_sc, *, scale_sq):
    # q_ref : (1, G, ch, tq)   query block of one (batch, head-group)
    # k_ref : (1, G, ch, tk)   key block
    # v_ref : (1, G, ch, tk)   value block
    # o_ref : (1, G, ch, tq)   output block (same layout as q)
    # qs_sc : (G, ch, tq)      scaled-query cache (input dtype)
    # m_sc  : (G, 1, tq) f32   running max of scores (per query)
    # l_sc  : (G, 1, tq) f32   running softmax denominator
    # acc_sc: (G, ch, tq) f32  running softmax-weighted value accumulator
    kv = pl.program_id(3)

    @pl.when(kv == 0)
    def _():
        # Single prescale: (q*s).(k*s) == q.k * s^2; applied once per q block
        # (O(nq) multiplies) instead of twice per kv step (O(nq*nk)).
        qs_sc[...] = q_ref[0] * jnp.asarray(scale_sq, dtype=qs_sc.dtype)
        m_sc[...] = jnp.full(m_sc.shape, -jnp.inf, jnp.float32)
        l_sc[...] = jnp.zeros(l_sc.shape, jnp.float32)
        acc_sc[...] = jnp.zeros(acc_sc.shape, jnp.float32)

    q = qs_sc[...]                            # (G, ch, tq)  input dtype
    k = k_ref[0]                              # (G, ch, tk)
    v = v_ref[0]                              # (G, ch, tk)

    # scores with keys on sublanes, queries on lanes:
    #   s[g, j, i] = sum_c k[g, c, j] * q[g, c, i]
    s = jax.lax.dot_general(
        k, q, dimension_numbers=(((1,), (1,)), ((0,), (0,))),
        preferred_element_type=jnp.float32)   # (G, tk, tq) f32

    m_prev = m_sc[...]                                            # (G, 1, tq)
    m_new = jnp.maximum(m_prev, jnp.max(s, axis=1, keepdims=True))
    alpha = jnp.exp(m_prev - m_new)                               # (G, 1, tq)
    # TODO(synk): on v6e/v7x with bf16 inputs the exp could run in bf16 on the
    # EUP at ~2x rate; kept in f32 here for accuracy headroom.
    p = jnp.exp(s - m_new)                                        # (G, tk, tq)
    l_sc[...] = alpha * l_sc[...] + jnp.sum(p, axis=1, keepdims=True)

    # contrib[g, c, i] = sum_j v[g, c, j] * p[g, j, i]   -> output layout.
    contrib = jax.lax.dot_general(
        v, p.astype(v.dtype), dimension_numbers=(((2,), (1,)), ((0,), (0,))),
        preferred_element_type=jnp.float32)   # (G, ch, tq) f32

    acc_sc[...] = alpha * acc_sc[...] + contrib
    m_sc[...] = m_new

    @pl.when(kv == pl.num_programs(3) - 1)
    def _():
        inv_l = pl.reciprocal(l_sc[...], approx=True)   # EUP, not VPU divide
        o_ref[0] = (acc_sc[...] * inv_l).astype(o_ref.dtype)


# ---------------------------------------------------------------------------
# Wrapper helpers
# ---------------------------------------------------------------------------
def _vmem_capacity_bytes():
    try:
        cap = getattr(pltpu.get_tpu_info(), "vmem_capacity_bytes", None)
        if cap:
            return int(cap)
    except Exception:
        pass
    return 64 << 20   # conservative default: v7x per-TensorCore VMEM


def _sublane_multiple(dtype):
    itemsize = jnp.dtype(dtype).itemsize
    return {4: 8, 2: 16, 1: 32}.get(itemsize, 8)


def _pick_head_group(n_heads, ch, bs):
    """Largest divisor G of n_heads with G*ch <= 128, while keeping at least
    two parallel grid iterations so both TensorCores get work on v7x."""
    if ch >= 128:
        return 1
    best = 1
    for g in range(1, n_heads + 1):
        if n_heads % g:
            continue
        if g * ch > 128:
            break
        if g > 1 and bs * (n_heads // g) < 2:
            continue
        best = g
    return best


def _seq_block_candidates(length, max_block, prefer_full):
    """Candidate block sizes, most-preferred (largest) first.  Every candidate
    is either the full length or a multiple of 128 that divides the length."""
    cands = []
    if prefer_full or length <= max_block:
        cands.append(length)
    for b in (2048, 1024, 512, 256, 128):
        if b <= max_block and b < length and length % b == 0:
            cands.append(b)
    if not cands:
        # TODO(synk): lengths > max_block with no 128-multiple divisor would
        # need a padded block + key mask; fall back to one full-length block.
        cands.append(length)
    return cands


def _vmem_estimate_bytes(G, ch, tq, tk, itemsize):
    """Rough pipeline working-set estimate for the block-size picker."""
    tiles_in = 2 * G * ch * (tq + 2 * tk) * itemsize   # q,k,v double-buffered
    tiles_out = 2 * G * ch * tq * itemsize
    scratch = G * ch * tq * (4 + itemsize) + 2 * G * 8 * tq * 4
    temps = 4 * G * tk * tq * 4                        # s/p/exp/cast f32 temps
    return tiles_in + tiles_out + scratch + temps


def _check_seq_block(blk, length, name):
    assert length % blk == 0, f"{name}={blk} must divide length={length}"
    assert blk == length or blk % 128 == 0, (
        f"{name}={blk} must equal length or be a multiple of 128")


# ---------------------------------------------------------------------------
# Wrapper
# ---------------------------------------------------------------------------
def qkv_attention(qkv, n_heads, *, q_block=None, kv_block=None,
                  head_group=None):
    """Pallas equivalent of QKVAttention.forward.

    qkv: (bs, 3 * n_heads * ch, length)  ->  (bs, n_heads * ch, length)
    """
    bs, width, length = qkv.shape
    assert width % (3 * n_heads) == 0, (
        f"Width {width} is not divisible by {3 * n_heads}")
    ch = width // (3 * n_heads)
    itemsize = jnp.dtype(qkv.dtype).itemsize
    sub = _sublane_multiple(qkv.dtype)
    # TODO(synk): ch not a multiple of the dtype sublane tile would need
    # channel padding; assert instead of silently padding.
    assert ch % sub == 0, (
        f"per-head channels {ch} must be a multiple of {sub} for {qkv.dtype}")
    scale_sq = 1.0 / math.sqrt(ch)            # == (ch ** -0.25) ** 2

    G = head_group if head_group is not None else _pick_head_group(
        n_heads, ch, bs)
    assert n_heads % G == 0, f"head_group={G} must divide n_heads={n_heads}"
    hg = n_heads // G

    cap = _vmem_capacity_bytes()
    budget = int(cap * 0.55)

    tq_cands = ([q_block] if q_block is not None
                else _seq_block_candidates(length, 512, prefer_full=False))
    tk_cands = ([kv_block] if kv_block is not None
                else _seq_block_candidates(length, 2048, prefer_full=True))
    tq, tk = tq_cands[-1], tk_cands[-1]       # smallest combo as last resort
    for cand_tk in tk_cands:                  # prefer whole-KV residency
        hit = next((cand_tq for cand_tq in tq_cands
                    if _vmem_estimate_bytes(G, ch, cand_tq, cand_tk,
                                            itemsize) <= budget), None)
        if hit is not None:
            tq, tk = hit, cand_tk
            break
    _check_seq_block(tq, length, "q_block")
    _check_seq_block(tk, length, "kv_block")
    nq, nk = length // tq, length // tk

    # Free (metadata-only) reshape: axis 1 becomes [q heads | k heads | v heads]
    # so BlockSpecs carve whole head groups with no in-kernel reshapes.
    qkv4 = qkv.reshape(bs, 3 * n_heads, ch, length)

    kernel = functools.partial(_qkv_attention_kernel, scale_sq=scale_sq)

    cost = pl.CostEstimate(
        flops=int(4 * bs * n_heads * ch * length * length),
        transcendentals=int(bs * n_heads * length * length),
        bytes_accessed=int((qkv.size + bs * n_heads * ch * length) * itemsize),
    )

    out4 = pl.pallas_call(
        kernel,
        out_shape=jax.ShapeDtypeStruct((bs, n_heads, ch, length), qkv.dtype),
        grid_spec=pltpu.PrefetchScalarGridSpec(
            num_scalar_prefetch=0,
            grid=(bs, hg, nq, nk),
            in_specs=[
                # q / k / v head groups are carved straight out of the packed
                # qkv tensor: block index along axis 1 is in units of G heads.
                pl.BlockSpec((1, G, ch, tq), lambda b, g, i, s: (b, g, 0, i)),
                pl.BlockSpec((1, G, ch, tk),
                             lambda b, g, i, s: (b, hg + g, 0, s)),
                pl.BlockSpec((1, G, ch, tk),
                             lambda b, g, i, s: (b, 2 * hg + g, 0, s)),
            ],
            out_specs=pl.BlockSpec((1, G, ch, tq),
                                   lambda b, g, i, s: (b, g, 0, i)),
            scratch_shapes=[
                pltpu.VMEM((G, ch, tq), qkv.dtype),    # scaled-q cache
                pltpu.VMEM((G, 1, tq), jnp.float32),   # running max
                pltpu.VMEM((G, 1, tq), jnp.float32),   # running denominator
                pltpu.VMEM((G, ch, tq), jnp.float32),  # running numerator
            ],
        ),
        compiler_params=pltpu.CompilerParams(
            dimension_semantics=("parallel", "parallel", "parallel",
                                 "arbitrary"),
            vmem_limit_bytes=int(cap * 0.75)),
        cost_estimate=cost,
    )(qkv4, qkv4, qkv4)

    return out4.reshape(bs, n_heads * ch, length)


# ---------------------------------------------------------------------------
# Pure-JAX reference (mirrors the PyTorch module exactly)
# ---------------------------------------------------------------------------
def _qkv_attention_ref(qkv, n_heads):
    bs, width, length = qkv.shape
    ch = width // (3 * n_heads)
    q, k, v = jnp.split(qkv, 3, axis=1)
    scale = 1.0 / math.sqrt(math.sqrt(ch))
    q = (q * scale).reshape(bs * n_heads, ch, length)
    k = (k * scale).reshape(bs * n_heads, ch, length)
    v = v.reshape(bs * n_heads, ch, length)
    w = jnp.einsum("bct,bcs->bts", q, k, precision=jax.lax.Precision.HIGHEST)
    w = jax.nn.softmax(w.astype(jnp.float32), axis=-1).astype(w.dtype)
    a = jnp.einsum("bts,bcs->bct", w, v, precision=jax.lax.Precision.HIGHEST)
    return a.reshape(bs, -1, length)


# ---------------------------------------------------------------------------
if __name__ == "__main__":
    key = jax.random.PRNGKey(0)
    k1, k2, k3 = jax.random.split(key, 3)

    # --- small test: bs=2, n_heads=2, ch=16 (hidden=32), length=8 -----------
    bs, n_heads, ch, length = 2, 2, 16, 8
    width = 3 * n_heads * ch                               # 96
    qkv = jax.random.normal(k1, (bs, width, length), jnp.float32)

    out = jax.block_until_ready(qkv_attention(qkv, n_heads))
    ref = _qkv_attention_ref(qkv, n_heads)
    assert out.shape == (bs, n_heads * ch, length), out.shape
    assert jnp.allclose(out, ref, atol=2e-3, rtol=2e-3), (
        float(jnp.max(jnp.abs(out - ref))))

    # --- tiled online-softmax path (nq=2, nk=2) ------------------------------
    length2 = 256
    qkv2 = jax.random.normal(k2, (bs, width, length2), jnp.float32)
    out2 = jax.block_until_ready(
        qkv_attention(qkv2, n_heads, q_block=128, kv_block=128))
    ref2 = _qkv_attention_ref(qkv2, n_heads)
    assert out2.shape == (bs, n_heads * ch, length2), out2.shape
    assert jnp.allclose(out2, ref2, atol=2e-3, rtol=2e-3), (
        float(jnp.max(jnp.abs(out2 - ref2))))

    # --- default picker path (whole-KV-resident, head-grouped) ---------------
    out2b = jax.block_until_ready(qkv_attention(qkv2, n_heads))
    assert jnp.allclose(out2b, ref2, atol=2e-3, rtol=2e-3), (
        float(jnp.max(jnp.abs(out2b - ref2))))

    # --- bf16 path (dtype-aware sublane tiling, f32 accumulation) ------------
    qkv3 = jax.random.normal(k3, (bs, width, length2),
                             jnp.float32).astype(jnp.bfloat16)
    out3 = jax.block_until_ready(
        qkv_attention(qkv3, n_heads, q_block=128, kv_block=128))
    ref3 = _qkv_attention_ref(qkv3, n_heads)
    assert out3.shape == (bs, n_heads * ch, length2), out3.shape
    assert jnp.allclose(out3.astype(jnp.float32), ref3.astype(jnp.float32),
                        atol=5e-2, rtol=5e-2), (
        float(jnp.max(jnp.abs(out3.astype(jnp.float32)
                              - ref3.astype(jnp.float32)))))

    print("KERNEL_OK")
</pallas_src>

<mosaic_0001>
module attributes {stable_mosaic.version = 11 : i64} {
  func.func @_qkv_attention_kernel(%arg0: i32, %arg1: i32, %arg2: i32, %arg3: i32, %arg4: memref<1x2x16x8xf32, #tpu.memory_space<vmem>>, %arg5: memref<1x2x16x8xf32, #tpu.memory_space<vmem>>, %arg6: memref<1x2x16x8xf32, #tpu.memory_space<vmem>>, %arg7: memref<1x2x16x8xf32, #tpu.memory_space<vmem>>, %arg8: memref<2x16x8xf32, #tpu.memory_space<vmem>>, %arg9: memref<2x1x8xf32, #tpu.memory_space<vmem>>, %arg10: memref<2x1x8xf32, #tpu.memory_space<vmem>>, %arg11: memref<2x16x8xf32, #tpu.memory_space<vmem>>) attributes {dimension_semantics = [#tpu.dimension_semantics<parallel>, #tpu.dimension_semantics<parallel>, #tpu.dimension_semantics<parallel>, #tpu.dimension_semantics<arbitrary>], iteration_bounds = array<i64: 2, 1, 1, 1>, scalar_prefetch = 0 : i64, scratch_operands = 4 : i64, tpu.core_type = #tpu.core_type<tc>, window_params = [{transform_indices = @transform_0, window_bounds = array<i64: 1, 2, 16, 8>}, {transform_indices = @transform_1, window_bounds = array<i64: 1, 2, 16, 8>}, {transform_indices = @transform_2, window_bounds = array<i64: 1, 2, 16, 8>}, {transform_indices = @transform_3, window_bounds = array<i64: 1, 2, 16, 8>}]} {
    %c0_i32 = arith.constant 0 : i32
    %0 = arith.cmpi eq, %arg3, %c0_i32 : i32
    %1 = arith.extui %0 : i1 to i32
    %c0_i32_0 = arith.constant 0 : i32
    %2 = arith.cmpi ne, %1, %c0_i32_0 : i32
    scf.if %2 {
      %c0_34 = arith.constant 0 : index
      %c0_35 = arith.constant 0 : index
      %c0_36 = arith.constant 0 : index
      %c0_37 = arith.constant 0 : index
      %34 = vector.load %arg4[%c0_34, %c0_35, %c0_36, %c0_37] : memref<1x2x16x8xf32, #tpu.memory_space<vmem>>, vector<1x2x16x8xf32>
      %35 = vector.shape_cast %34 : vector<1x2x16x8xf32> to vector<2x16x8xf32>
      %cst_38 = arith.constant 2.500000e-01 : f32
      %36 = vector.broadcast %cst_38 : f32 to vector<2x16x8xf32>
      %37 = arith.mulf %35, %36 : vector<2x16x8xf32>
      %c0_39 = arith.constant 0 : index
      %c0_40 = arith.constant 0 : index
      %c0_41 = arith.constant 0 : index
      %38 = vector.load %arg8[%c0_39, %c0_40, %c0_41] : memref<2x16x8xf32, #tpu.memory_space<vmem>>, vector<2x16x8xf32>
      tpu.vector_store %arg8[%c0_39, %c0_40, %c0_41], %37 {strides = array<i32>} : memref<2x16x8xf32, #tpu.memory_space<vmem>>, vector<2x16x8xf32>,
      %cst_42 = arith.constant 0xFF800000 : f32
      %39 = vector.broadcast %cst_42 : f32 to vector<2x1x8xf32>
      %c0_43 = arith.constant 0 : index
      %c0_44 = arith.constant 0 : index
      %c0_45 = arith.constant 0 : index
      %40 = vector.load %arg9[%c0_43, %c0_44, %c0_45] : memref<2x1x8xf32, #tpu.memory_space<vmem>>, vector<2x1x8xf32>
      tpu.vector_store %arg9[%c0_43, %c0_44, %c0_45], %39 {strides = array<i32>} : memref<2x1x8xf32, #tpu.memory_space<vmem>>, vector<2x1x8xf32>,
      %cst_46 = arith.constant 0.000000e+00 : f32
      %41 = vector.broadcast %cst_46 : f32 to vector<2x1x8xf32>
      %c0_47 = arith.constant 0 : index
      %c0_48 = arith.constant 0 : index
      %c0_49 = arith.constant 0 : index
      %42 = vector.load %arg10[%c0_47, %c0_48, %c0_49] : memref<2x1x8xf32, #tpu.memory_space<vmem>>, vector<2x1x8xf32>
      tpu.vector_store %arg10[%c0_47, %c0_48, %c0_49], %41 {strides = array<i32>} : memref<2x1x8xf32, #tpu.memory_space<vmem>>, vector<2x1x8xf32>,
      %cst_50 = arith.constant 0.000000e+00 : f32
      %43 = vector.broadcast %cst_50 : f32 to vector<2x16x8xf32>
      %c0_51 = arith.constant 0 : index
      %c0_52 = arith.constant 0 : index
      %c0_53 = arith.constant 0 : index
      %44 = vector.load %arg11[%c0_51, %c0_52, %c0_53] : memref<2x16x8xf32, #tpu.memory_space<vmem>>, vector<2x16x8xf32>
      tpu.vector_store %arg11[%c0_51, %c0_52, %c0_53], %43 {strides = array<i32>} : memref<2x16x8xf32, #tpu.memory_space<vmem>>, vector<2x16x8xf32>,
    } else {
    }
    %c0 = arith.constant 0 : index
    %c0_1 = arith.constant 0 : index
    %c0_2 = arith.constant 0 : index
    %3 = vector.load %arg8[%c0, %c0_1, %c0_2] : memref<2x16x8xf32, #tpu.memory_space<vmem>>, vector<2x16x8xf32>
    %c0_3 = arith.constant 0 : index
    %c0_4 = arith.constant 0 : index
    %c0_5 = arith.constant 0 : index
    %c0_6 = arith.constant 0 : index
    %4 = vector.load %arg5[%c0_3, %c0_4, %c0_5, %c0_6] : memref<1x2x16x8xf32, #tpu.memory_space<vmem>>, vector<1x2x16x8xf32>
    %5 = vector.shape_cast %4 : vector<1x2x16x8xf32> to vector<2x16x8xf32>
    %c0_7 = arith.constant 0 : index
    %c0_8 = arith.constant 0 : index
    %c0_9 = arith.constant 0 : index
    %c0_10 = arith.constant 0 : index
    %6 = vector.load %arg6[%c0_7, %c0_8, %c0_9, %c0_10] : memref<1x2x16x8xf32, #tpu.memory_space<vmem>>, vector<1x2x16x8xf32>
    %7 = vector.shape_cast %6 : vector<1x2x16x8xf32> to vector<2x16x8xf32>
    %cst = arith.constant dense<0.000000e+00> : vector<2x8x8xf32>
    %8 = tpu.matmul %5, %3, %cst {dimension_numbers = #tpu.dot_dimension_numbers<[1], [1], [2], [2], [0, 0, 0, 2, 1, 2], [0], [0]>} : vector<2x16x8xf32>, vector<2x16x8xf32>, vector<2x8x8xf32> -> vector<2x8x8xf32>
    %c0_11 = arith.constant 0 : index
    %c0_12 = arith.constant 0 : index
    %c0_13 = arith.constant 0 : index
    %9 = vector.load %arg9[%c0_11, %c0_12, %c0_13] : memref<2x1x8xf32, #tpu.memory_space<vmem>>, vector<2x1x8xf32>
    %cst_14 = arith.constant dense<0xFF800000> : vector<2x8xf32>
    %10 = vector.multi_reduction <maximumf>, %8, %cst_14 [1] : vector<2x8x8xf32> to vector<2x8xf32>
    %11 = vector.shape_cast %10 : vector<2x8xf32> to vector<2x1x8xf32>
    %12 = arith.maximumf %9, %11 : vector<2x1x8xf32>
    %13 = arith.subf %9, %12 : vector<2x1x8xf32>
    %14 = math.exp %13 : vector<2x1x8xf32>
    %15 = vector.broadcast %12 : vector<2x1x8xf32> to vector<2x8x8xf32>
    %16 = arith.subf %8, %15 : vector<2x8x8xf32>
    %17 = math.exp %16 : vector<2x8x8xf32>
    %c0_15 = arith.constant 0 : index
    %c0_16 = arith.constant 0 : index
    %c0_17 = arith.constant 0 : index
    %18 = vector.load %arg10[%c0_15, %c0_16, %c0_17] : memref<2x1x8xf32, #tpu.memory_space<vmem>>, vector<2x1x8xf32>
    %19 = arith.mulf %14, %18 : vector<2x1x8xf32>
    %cst_18 = arith.constant dense<0.000000e+00> : vector<2x8xf32>
    %20 = vector.multi_reduction <add>, %17, %cst_18 [1] : vector<2x8x8xf32> to vector<2x8xf32>
    %21 = vector.shape_cast %20 : vector<2x8xf32> to vector<2x1x8xf32>
    %22 = arith.addf %19, %21 : vector<2x1x8xf32>
    %c0_19 = arith.constant 0 : index
    %c0_20 = arith.constant 0 : index
    %c0_21 = arith.constant 0 : index
    %23 = vector.load %arg10[%c0_19, %c0_20, %c0_21] : memref<2x1x8xf32, #tpu.memory_space<vmem>>, vector<2x1x8xf32>
    tpu.vector_store %arg10[%c0_19, %c0_20, %c0_21], %22 {strides = array<i32>} : memref<2x1x8xf32, #tpu.memory_space<vmem>>, vector<2x1x8xf32>,
    %cst_22 = arith.constant dense<0.000000e+00> : vector<2x16x8xf32>
    %24 = tpu.matmul %7, %17, %cst_22 {dimension_numbers = #tpu.dot_dimension_numbers<[2], [1], [1], [2], [0, 0, 0, 1, 1, 2], [0], [0]>} : vector<2x16x8xf32>, vector<2x8x8xf32>, vector<2x16x8xf32> -> vector<2x16x8xf32>
    %c0_23 = arith.constant 0 : index
    %c0_24 = arith.constant 0 : index
    %c0_25 = arith.constant 0 : index
    %25 = vector.load %arg11[%c0_23, %c0_24, %c0_25] : memref<2x16x8xf32, #tpu.memory_space<vmem>>, vector<2x16x8xf32>
    %26 = vector.broadcast %14 : vector<2x1x8xf32> to vector<2x16x8xf32>
    %27 = arith.mulf %26, %25 : vector<2x16x8xf32>
    %28 = arith.addf %27, %24 : vector<2x16x8xf32>
    %c0_26 = arith.constant 0 : index
    %c0_27 = arith.constant 0 : index
    %c0_28 = arith.constant 0 : index
    %29 = vector.load %arg11[%c0_26, %c0_27, %c0_28] : memref<2x16x8xf32, #tpu.memory_space<vmem>>, vector<2x16x8xf32>
    tpu.vector_store %arg11[%c0_26, %c0_27, %c0_28], %28 {strides = array<i32>} : memref<2x16x8xf32, #tpu.memory_space<vmem>>, vector<2x16x8xf32>,
    %c0_29 = arith.constant 0 : index
    %c0_30 = arith.constant 0 : index
    %c0_31 = arith.constant 0 : index
    %30 = vector.load %arg9[%c0_29, %c0_30, %c0_31] : memref<2x1x8xf32, #tpu.memory_space<vmem>>, vector<2x1x8xf32>
    tpu.vector_store %arg9[%c0_29, %c0_30, %c0_31], %12 {strides = array<i32>} : memref<2x1x8xf32, #tpu.memory_space<vmem>>, vector<2x1x8xf32>,
    %c0_i32_32 = arith.constant 0 : i32
    %31 = arith.cmpi eq, %arg3, %c0_i32_32 : i32
    %32 = arith.extui %31 : i1 to i32
    %c0_i32_33 = arith.constant 0 : i32
    %33 = arith.cmpi ne, %32, %c0_i32_33 : i32
    scf.if %33 {
      %c0_34 = arith.constant 0 : index
      %c0_35 = arith.constant 0 : index
      %c0_36 = arith.constant 0 : index
      %34 = vector.load %arg10[%c0_34, %c0_35, %c0_36] : memref<2x1x8xf32, #tpu.memory_space<vmem>>, vector<2x1x8xf32>
      %35 = tpu.reciprocal %34 {approx = true} : vector<2x1x8xf32> -> vector<2x1x8xf32>
      %c0_37 = arith.constant 0 : index
      %c0_38 = arith.constant 0 : index
      %c0_39 = arith.constant 0 : index
      %36 = vector.load %arg11[%c0_37, %c0_38, %c0_39] : memref<2x16x8xf32, #tpu.memory_space<vmem>>, vector<2x16x8xf32>
      %37 = vector.broadcast %35 : vector<2x1x8xf32> to vector<2x16x8xf32>
      %38 = arith.mulf %36, %37 : vector<2x16x8xf32>
      %c0_40 = arith.constant 0 : index
      %c0_41 = arith.constant 0 : index
      %c0_42 = arith.constant 0 : index
      %c0_43 = arith.constant 0 : index
      %39 = vector.load %arg7[%c0_40, %c0_41, %c0_42, %c0_43] : memref<1x2x16x8xf32, #tpu.memory_space<vmem>>, vector<1x2x16x8xf32>
      %40 = vector.shape_cast %39 : vector<1x2x16x8xf32> to vector<2x16x8xf32>
      %41 = vector.shape_cast %38 : vector<2x16x8xf32> to vector<1x2x16x8xf32>
      tpu.vector_store %arg7[%c0_40, %c0_41, %c0_42, %c0_43], %41 {strides = array<i32>} : memref<1x2x16x8xf32, #tpu.memory_space<vmem>>, vector<1x2x16x8xf32>,
    } else {
    }
    return
  }
  func.func @transform_0(%arg0: i32, %arg1: i32, %arg2: i32, %arg3: i32) -> (i32, i32, i32, i32) {
    %c0_i32 = arith.constant 0 : i32
    %c0_i32_0 = arith.constant 0 : i32
    return %arg0, %arg1, %c0_i32, %arg2 : i32, i32, i32, i32
  }
  func.func @transform_1(%arg0: i32, %arg1: i32, %arg2: i32, %arg3: i32) -> (i32, i32, i32, i32) {
    %c1_i32 = arith.constant 1 : i32
    %0 = arith.addi %c1_i32, %arg1 : i32
    %c0_i32 = arith.constant 0 : i32
    %c0_i32_0 = arith.constant 0 : i32
    return %arg0, %0, %c0_i32, %arg3 : i32, i32, i32, i32
  }
  func.func @transform_2(%arg0: i32, %arg1: i32, %arg2: i32, %arg3: i32) -> (i32, i32, i32, i32) {
    %c2_i32 = arith.constant 2 : i32
    %0 = arith.addi %c2_i32, %arg1 : i32
    %c0_i32 = arith.constant 0 : i32
    %c0_i32_0 = arith.constant 0 : i32
    return %arg0, %0, %c0_i32, %arg3 : i32, i32, i32, i32
  }
  func.func @transform_3(%arg0: i32, %arg1: i32, %arg2: i32, %arg3: i32) -> (i32, i32, i32, i32) {
    %c0_i32 = arith.constant 0 : i32
    %c0_i32_0 = arith.constant 0 : i32
    return %arg0, %arg1, %c0_i32, %arg2 : i32, i32, i32, i32
  }
}

</mosaic_0001>

<bundles_post_ra>
// kernel: tpu_custom_call.1
= control target key start
LH: loop header
LB: loop body
LE: loop exit
PB: predicated region body
PF: predicated region fallthrough
CT: control target
= control target key end

     0   :  { %s951_s12 = smov 0   ;;  %s953_s13 = smov 0   ;;  %s1031_s0 = inlined_call_operand.vmem [shape: f32[2,6,16,8], index: 0, kind: input, shape index: {}]   ;;  %s1032_s1 = inlined_call_operand.vmem [shape: f32[2,6,16,8], index: 1, kind: input, shape index: {}]   ;;  %s1033_s2 = inlined_call_operand.vmem [shape: f32[2,6,16,8], index: 2, kind: input, shape index: {}]   ;;  %s1034_s3 = inlined_call_operand.vmem [shape: f32[2,2,16,8], index: 3, kind: output, shape index: {}]  }
   0x1   :  { %s955_s14 = smov 0  }
   0x2 LB: > { %s39_s15 = sadd.s32 1, %s923_s13  ;;  %p845_p0 = scmp.ge.s32.totalorder %s927_s14, 1  ;;  %s927_s14 = sphi %s955_s14, %s13_s14   ;;  %s923_s13 = sphi %s953_s13, %s1036_s13   ;;  %s919_s12 = sphi %s951_s12, %s1035_s12  }
   0x3   : > { %p41_p1 = scmp.ge.s32.totalorder %s39_s15, 2  ;;  %p234_p2 = scmp.lt.s32.totalorder %s927_s14, 3 }
   0x5   : > { %s1038_s15 = smov (%p41_p1, %s39_s15), 0  ;;  %p235_p3 = pnand %p845_p0, %p234_p2 }
   0x6   : > { %p303_p4 = scmp.lt.s32.totalorder (!%p235_p3), %s919_s12, 1 }
   0x7   : > { %238 = sbr.rel (%p235_p3) target bundleno = 492 (0x1ec), region = 32 }
   0xc   : > { %s1040_s12 = smov (!%p303_p4, %s919_s12), 1  ;;  %vm374_vm0 = vcmask 64512   ;;  %vm379_vm1 = vcmask 57344   ;;  %v929_v16 = vmov -inf   ;;  %vm432_vm2 = vcmask 130048  }
   0xd   : > { %s972_s16 = smul.u32 96, %s1040_s12  ;;  %380 = vst.msk [vmem:[#allocation3] sm:$0x1] %vm379_vm1, %v929_v16  ;;  %v930_v19 = vmov 0.0   ;;  %s863_s28 = sshll.u32 %s1040_s12, 5 }
   0xe   : > { %381 = vst.msk [vmem:[#allocation3 + $0x1] sm:$0x1] %vm379_vm1, %v929_v16  ;;  %s360_s4 = scalar_lea.vmem %s1034_s3, %s863_s28 }
   0xf   : > { %s860_s17 = sadd.s32 32, %s972_s16  ;;  %s314_s20 = scalar_lea.vmem %s1031_s0, %s972_s16  ;;  %382 = vst.msk [vmem:[#allocation4] sm:$0x1] %vm379_vm1, %v930_v19 }
  0x10   : > { %s329_s23 = scalar_lea.vmem %s1032_s1, %s860_s17  ;;  %v366_v0 = vld [vmem:[%s314_s20] sm:$0xff]  ;;  %v367_v1 = vld [vmem:[%s314_s20 + $0x8] sm:$0xff]  ;;  %v368_v2 = vld [vmem:[%s314_s20 + $0x10] sm:$0xff]  ;;  %384 = vst.msk [vmem:[#allocation5] sm:$0xff] %vm374_vm0, %v930_v19  ;;  %s862_s24 = sadd.s32 64, %s972_s16 }
  0x11   : > { %v394_v3 = vld [vmem:[%s329_s23 + $0x10] sm:$0xff]  ;;  %v369_v4 = vld [vmem:[%s314_s20 + $0x18] sm:$0xff]  ;;  %v370_v5 = vmul.f32 0.25, %v366_v0  ;;  %v371_v6 = vmul.f32 0.25, %v367_v1  ;;  %v372_v7 = vmul.f32 0.25, %v368_v2  ;;  %v392_v8 = vld [vmem:[%s329_s23] sm:$0xff]  ;;  %s345_s27 = scalar_lea.vmem %s1033_s2, %s862_s24 }
  0x12   : > { %456 = vxpose.xlu1.b32.start [1/2] (short) (narrow) %v394_v3, 8  ;;  %v373_v9 = vmul.f32 0.25, %v369_v4  ;;  %400 = vxpose.xlu0.b32.start [1/2] (short) (narrow) %v392_v8, 8  ;;  %v395_v10 = vld [vmem:[%s329_s23 + $0x18] sm:$0xff]  ;;  %v393_v11 = vld [vmem:[%s329_s23 + $0x8] sm:$0xff]  ;;  %385 = vst.msk [vmem:[#allocation5 + $0x8] sm:$0xff] %vm374_vm0, %v930_v19 }
  0x13   : > { %375 = vst.msk [vmem:[#allocation2] sm:$0xff] %vm374_vm0, %v370_v5  ;;  %v396_v48 = vld [vmem:[%s345_s27] sm:$0xff]  ;;  %v398_v51 = vld [vmem:[%s345_s27 + $0x10] sm:$0xff]  ;;  %v397_v62 = vld [vmem:[%s345_s27 + $0x8] sm:$0xff] }
  0x14   : > { %376 = vst.msk [vmem:[#allocation2 + $0x8] sm:$0xff] %vm374_vm0, %v371_v6  ;;  %v511_v34 = vld [vmem:[#allocation3] sm:$0x1]  ;;  %v399_v0 = vld [vmem:[%s345_s27 + $0x18] sm:$0xff] }
  0x15   : > { %377 = vst.msk [vmem:[#allocation2 + $0x10] sm:$0xff] %vm374_vm0, %v372_v7  ;;  %v512_v35 = vld [vmem:[#allocation3 + $0x1] sm:$0x1] }
  0x16   : > { %378 = vst.msk [vmem:[#allocation2 + $0x18] sm:$0xff] %vm374_vm0, %v373_v9  ;;  %v548_v3 = vld [vmem:[#allocation4] sm:$0x1] }
  0x17   : > { %383 = vst.msk [vmem:[#allocation4 + $0x1] sm:$0x1] %vm379_vm1, %v930_v19 }
  0x18   : > { %386 = vst.msk [vmem:[#allocation5 + $0x10] sm:$0xff] %vm374_vm0, %v930_v19 }
  0x19   : > { %387 = vst.msk [vmem:[#allocation5 + $0x18] sm:$0xff] %vm374_vm0, %v930_v19 }
  0x1a   : > { %457 = vxpose.xlu1.b32.end [2/2] (short) (narrow) %v395_v10, 8  ;;  %401 = vxpose.xlu0.b32.end [2/2] (short) (narrow) %v393_v11, 8  ;;  %v388_v14 = vld [vmem:[#allocation2] sm:$0xff] }
  0x1b   : > { %v389_v12 = vld [vmem:[#allocation2 + $0x8] sm:$0xff] }
  0x1c   : > { %450 = vmatpush.msra.mxu0 %v389_v12  ;;  %v390_v15 = vld [vmem:[#allocation2 + $0x10] sm:$0xff] }
  0x1d   : > { %v391_v13 = vld [vmem:[#allocation2 + $0x18] sm:$0xff] }
  0x1e   : > { %505 = vmatpush.msra.mxu1 %v391_v13  ;;  %451 = vmatpush.msra.mxu0 %v388_v14  ;;  %v549_v6 = vld [vmem:[#allocation4 + $0x1] sm:$0x1] }
  0x20   : > { %506 = vmatpush.msra.mxu1 %v390_v15  ;;  %v629_v15 = vld [vmem:[#allocation5] sm:$0xff] }
  0xb6   : > { %v472_v17 = vpop.trf.xlu1  ;;  %v416_v18 = vpop.trf.xlu0 }
  0xb7   : > { %851 = vmatmul.msk.f32.vlgmr.msra.gmra.mxu0 %vm432_vm2, %v416_v18  ;;  %852 = vmatmul.msk.f32.vlgmr.msra.gmra.mxu1 %vm432_vm2, %v472_v17  ;;  %v631_v18 = vld [vmem:[#allocation5 + $0x10] sm:$0xff] }
 0x134   : > { %v453_v20 = vpop.f32.mrf.mxu0  ;;  %v508_v21 = vpop.f32.mrf.mxu1 }
 0x135   : > { %v514_v22 = vsel %vm374_vm0, %v453_v20, -inf  ;;  %v521_v23 = vsel %vm374_vm0, %v508_v21, -inf }
 0x136   : > { %v515_v24 = vrot.slane %v514_v22, 4  ;;  %v522_v25 = vrot.slane %v521_v23, 4 }
 0x138   : > { %v516_v26 = vmax.f32 %v514_v22, %v515_v24  ;;  %v523_v27 = vmax.f32 %v521_v23, %v522_v25 }
 0x13a   : > { %v517_v28 = vrot.slane %v516_v26, 2  ;;  %v524_v29 = vrot.slane %v523_v27, 2 }
 0x13c   : > { %v518_v30 = vmax.f32 %v516_v26, %v517_v28  ;;  %v525_v31 = vmax.f32 %v523_v27, %v524_v29  ;;  %v630_v26 = vld [vmem:[#allocation5 + $0x8] sm:$0xff]  ;;  %v632_v27 = vld [vmem:[#allocation5 + $0x18] sm:$0xff] }
 0x13e   : > { %v519_v32 = vrot.slane %v518_v30, 1  ;;  %v526_v33 = vrot.slane %v525_v31, 1 }
 0x140   : > { %v520_v36 = vmax.f32 %v518_v30, %v519_v32  ;;  %v527_v37 = vmax.f32 %v525_v31, %v526_v33 }
 0x142   : > { %v528_v38 = vmax.f32 %v511_v34, %v520_v36  ;;  %v529_v39 = vmax.f32 %v512_v35, %v527_v37 }
 0x144   : > { %v538_v40 = vperm.slane %v528_v38, 0  ;;  %651 = vst.msk [vmem:[#allocation3] sm:$0x1] %vm379_vm1, %v528_v38  ;;  %v539_v41 = vperm.slane %v529_v39, 0  ;;  %v530_v46 = vsub.f32 %v511_v34, %v528_v38  ;;  %v531_v47 = vsub.f32 %v512_v35, %v529_v39 }
 0x145   : > { %652 = vst.msk [vmem:[#allocation3 + $0x1] sm:$0x1] %vm379_vm1, %v529_v39 }
 0x146   : > { %v542_v42 = vsub.f32 %v453_v20, %v538_v40  ;;  %v543_v43 = vsub.f32 %v508_v21, %v539_v41  ;;  %v532_v49 = vmul.f32 1.442695, %v530_v46  ;;  %v534_v52 = vmul.f32 1.442695, %v531_v47 }
 0x148   : > { %v544_v44 = vmul.f32 1.442695, %v542_v42  ;;  %v546_v45 = vmul.f32 1.442695, %v543_v43 }
 0x14a   : > { %893 = vpow2.f32 %v544_v44 }
 0x14b   : > { %895 = vpow2.f32 %v546_v45 }
 0x14c   : > { %897 = vpow2.f32 %v532_v49 }
 0x14d   : > { %899 = vpow2.f32 %v534_v52 }
 0x150   : > { %v894_v50 = vpop.eup %893 }
 0x151   : > { %v896_v53 = vpop.eup %895  ;;  %v552_v54 = vsel %vm374_vm0, %v894_v50, 0.0  ;;  %592 = vmatpush.msra.mxu2 %v894_v50 }
 0x152   : > { %v553_v55 = vrot.slane %v552_v54, 4  ;;  %v559_v56 = vsel %vm374_vm0, %v896_v53, 0.0  ;;  %621 = vmatpush.msra.mxu3 %v896_v53  ;;  %853 = vmatmul.msk.f32.vlgmr.msra.gmra.mxu2 %vm374_vm0, %v396_v48  ;;  %v898_v1 = vpop.eup %897 }
 0x153   : > { %v560_v57 = vrot.slane %v559_v56, 4  ;;  %855 = vmatmul.msk.f32.vlgmr.msra.gmra.mxu3 %vm374_vm0, %v398_v51  ;;  %v900_v4 = vpop.eup %899  ;;  %v550_v9 = vmul.f32 %v898_v1, %v548_v3  ;;  %v635_v14 = vperm.slane %v898_v1, 0 }
 0x154   : > { %v554_v58 = vadd.f32 %v553_v55, %v552_v54  ;;  %v551_v11 = vmul.f32 %v900_v4, %v549_v6  ;;  %v636_v16 = vperm.slane %v900_v4, 0 }
 0x155   : > { %v561_v59 = vadd.f32 %v560_v57, %v559_v56  ;;  %v639_v20 = vmul.f32 %v635_v14, %v629_v15  ;;  %v640_v30 = vmul.f32 %v635_v14, %v630_v26 }
 0x156   : > { %v555_v60 = vrot.slane %v554_v58, 2  ;;  %v641_v22 = vmul.f32 %v636_v16, %v631_v18  ;;  %v642_v32 = vmul.f32 %v636_v16, %v632_v27 }
 0x157   : > { %v562_v61 = vrot.slane %v561_v59, 2 }
 0x158   : > { %v556_v63 = vadd.f32 %v555_v60, %v554_v58 }
 0x159   : > { %v563_v2 = vadd.f32 %v562_v61, %v561_v59 }
 0x15a   : > { %v557_v5 = vrot.slane %v556_v63, 1  ;;  %854 = vmatmul.msk.f32.gmra.mxu2 %vm374_vm0, %v397_v62 }
 0x15b   : > { %v564_v7 = vrot.slane %v563_v2, 1  ;;  %856 = vmatmul.msk.f32.gmra.mxu3 %vm374_vm0, %v399_v0 }
 0x15c   : > { %v558_v8 = vadd.f32 %v557_v5, %v556_v63 }
 0x15d   : > { %v565_v10 = vadd.f32 %v564_v7, %v563_v2 }
 0x15e   : > { %v566_v12 = vadd.f32 %v558_v8, %v550_v9 }
 0x15f   : > { %v567_v13 = vadd.f32 %v565_v10, %v551_v11 }
 0x160   : > { %569 = vst.msk [vmem:[#allocation4] sm:$0x1] %vm379_vm1, %v566_v12 }
 0x161   : > { %570 = vst.msk [vmem:[#allocation4 + $0x1] sm:$0x1] %vm379_vm1, %v567_v13 }
 0x167   : > { %v656_v17 = vld [vmem:[#allocation4] sm:$0x1] }
 0x168   : > { %v657_v19 = vld [vmem:[#allocation4 + $0x1] sm:$0x1]  ;;  %901 = vrcp.f32 %v656_v17 }
 0x169   : > { %903 = vrcp.f32 %v657_v19 }
 0x16e   : > { %v902_v28 = vpop.eup %901 }
 0x16f   : > { %v904_v29 = vpop.eup %903  ;;  %v666_v33 = vperm.slane %v902_v28, 0 }
 0x170   : > { %v667_v37 = vperm.slane %v904_v29, 0 }
 0x1d5   : > { %v594_v21 = vpop.f32.mrf.mxu2 }
 0x1d6   : > { %v643_v23 = vadd.f32 %v639_v20, %v594_v21  ;;  %v623_v24 = vpop.f32.mrf.mxu3 }
 0x1d7   : > { %v645_v25 = vadd.f32 %v641_v22, %v623_v24 }
 0x1d8   : > { %647 = vst.msk [vmem:[#allocation5] sm:$0xff] %vm374_vm0, %v643_v23 }
 0x1d9   : > { %649 = vst.msk [vmem:[#allocation5 + $0x10] sm:$0xff] %vm374_vm0, %v645_v25 }
 0x1dd   : > { %v597_v31 = vpop.f32.mrf.mxu2 }
 0x1de   : > { %v644_v34 = vadd.f32 %v640_v30, %v597_v31  ;;  %v626_v35 = vpop.f32.mrf.mxu3 }
 0x1df   : > { %v660_v36 = vld [vmem:[#allocation5] sm:$0xff]  ;;  %v646_v38 = vadd.f32 %v642_v32, %v626_v35 }
 0x1e0   : > { %v670_v39 = vmul.f32 %v666_v33, %v660_v36  ;;  %v662_v40 = vld [vmem:[#allocation5 + $0x10] sm:$0xff]  ;;  %648 = vst.msk [vmem:[#allocation5 + $0x8] sm:$0xff] %vm374_vm0, %v644_v34 }
 0x1e1   : > { %v672_v41 = vmul.f32 %v667_v37, %v662_v40  ;;  %650 = vst.msk [vmem:[#allocation5 + $0x18] sm:$0xff] %vm374_vm0, %v646_v38 }
 0x1e2   : > { %674 = vst.msk [vmem:[%s360_s4] sm:$0xff] %vm374_vm0, %v670_v39 }
 0x1e3   : > { %676 = vst.msk [vmem:[%s360_s4 + $0x10] sm:$0xff] %vm374_vm0, %v672_v41 }
 0x1e7   : > { %v661_v42 = vld [vmem:[#allocation5 + $0x8] sm:$0xff] }
 0x1e8   : > { %v671_v43 = vmul.f32 %v666_v33, %v661_v42  ;;  %v663_v44 = vld [vmem:[#allocation5 + $0x18] sm:$0xff] }
 0x1e9   : > { %v673_v45 = vmul.f32 %v667_v37, %v663_v44 }
 0x1ea   : > { %675 = vst.msk [vmem:[%s360_s4 + $0x8] sm:$0xff] %vm374_vm0, %v671_v43 }
 0x1eb   : > { %677 = vst.msk [vmem:[%s360_s4 + $0x18] sm:$0xff] %vm374_vm0, %v673_v45 }
 0x1ec PF: > { %s13_s14 = sadd.s32 1, %s927_s14   ;;  %s1035_s12 = smov %s923_s13 }
 0x1ed   : > { %p10_p5 = scmp.ge.s32.totalorder %s13_s14, 4   ;;  %s1036_s13 = smov %s1038_s15 }
 0x1ef   :  { %12 = sbr.rel (!%p10_p5) target bundleno = 2 (0x2), region = 76 }

</bundles_post_ra>
